<compile_context>
chip_gen: v6e
topology: v6e:2x2x1
jax: 0.10.0
libtpu: 0.0.40
codegen_flags: <defaults>
</compile_context>

<pallas_src>
import functools

import jax
import jax.numpy as jnp
from jax import lax
from jax.experimental import pallas as pl
from jax.experimental.pallas import tpu as pltpu


# ---------------------------------------------------------------------------
# Pallas kernel: fill out_ref with i.i.d. standard-normal samples.
# ---------------------------------------------------------------------------
def _mix32(x):
    """lowbias32-style avalanche hash, uint32 -> uint32 (VPU int ops only)."""
    x = x ^ (x >> jnp.uint32(16))
    x = x * jnp.uint32(0x21F0AAAD)
    x = x ^ (x >> jnp.uint32(15))
    x = x * jnp.uint32(0x735A2D97)
    x = x ^ (x >> jnp.uint32(15))
    return x


def _randn_kernel(seed_ref, out_ref):
    b, c = out_ref.shape
    ch = (c + 1) // 2  # generate half the columns; cos/sin give both halves

    # Per-element counters (2-D iota keeps Mosaic happy).
    row = lax.broadcasted_iota(jnp.uint32, (b, ch), 0)
    col = lax.broadcasted_iota(jnp.uint32, (b, ch), 1)
    seed = seed_ref[0].astype(jnp.uint32)
    base = row * jnp.uint32(ch) + col + seed * jnp.uint32(0x9E3779B9)

    # Two decorrelated 32-bit streams.
    bits1 = _mix32(base)
    bits2 = _mix32(base ^ jnp.uint32(0x5BF03635))

    # Uniforms strictly inside (0, 1): 24 mantissa-exact bits + half-ulp offset.
    # Kept in float32 end-to-end (v5e EUP/VPU have no bf16 path).
    inv24 = jnp.float32(1.0 / (1 << 24))
    u1 = ((bits1 & jnp.uint32(0xFFFFFF)).astype(jnp.int32).astype(jnp.float32)
          + jnp.float32(0.5)) * inv24
    u2 = ((bits2 & jnp.uint32(0xFFFFFF)).astype(jnp.int32).astype(jnp.float32)
          + jnp.float32(0.5)) * inv24

    # Box-Muller, both branches used (halves log/sqrt/PRNG cost per output).
    r = jnp.sqrt(jnp.float32(-2.0) * jnp.log(u1))
    theta = jnp.float32(2.0 * 3.14159265358979323846) * u2
    z = jnp.concatenate([r * jnp.cos(theta), r * jnp.sin(theta)], axis=-1)

    if 2 * ch != c:  # static Python branch; only taken for odd num_classes
        z = z[:, :c]
    out_ref[...] = z.astype(out_ref.dtype)


# ---------------------------------------------------------------------------
# Jitted forward: one executable = one pallas_call, logical output shape.
# ---------------------------------------------------------------------------
def _stgcn_stub_forward(x, seed, *, num_classes):
    batch = x.shape[0] if x.ndim > 0 else 1
    seed_arr = jnp.reshape(seed.astype(jnp.int32), (1,))
    return pl.pallas_call(
        _randn_kernel,
        out_shape=jax.ShapeDtypeStruct((batch, num_classes), jnp.float32),
        in_specs=[pl.BlockSpec(memory_space=pltpu.MemorySpace.SMEM)],
        out_specs=pl.BlockSpec(memory_space=pltpu.MemorySpace.VMEM),
    )(seed_arr)


# ---------------------------------------------------------------------------
# Model wrapper mirroring STGCNModel.__init__ / forward.
# ---------------------------------------------------------------------------
class STGCNModelPallas:
    def __init__(self, num_classes=12, in_channels=3, num_nodes=17, seed=0):
        self.num_classes = num_classes
        self.in_channels = in_channels
        self.num_nodes = num_nodes
        self.seed = int(seed)
        self._call_count = 0

        # Parameters declared by the PyTorch module, kept only for shape
        # parity -- the reference forward never touches them.
        key = jax.random.PRNGKey(42)
        k_fc_w, k_fc_b = jax.random.split(key)
        bn_feat = in_channels * num_nodes
        self.data_bn_weight = jnp.ones((bn_feat,), jnp.float32)
        self.data_bn_bias = jnp.zeros((bn_feat,), jnp.float32)
        self.data_bn_running_mean = jnp.zeros((bn_feat,), jnp.float32)
        self.data_bn_running_var = jnp.ones((bn_feat,), jnp.float32)
        self.fcn_weight = 0.01 * jax.random.normal(k_fc_w, (num_classes, 256),
                                                   jnp.float32)
        self.fcn_bias = 0.01 * jax.random.normal(k_fc_b, (num_classes,),
                                                 jnp.float32)
        # TODO(synk): st_gcn_networks / edge_importance are empty in the
        # reference and forward never calls data_bn/fcn; nothing to lower.

        # Single jitted executable (pallas_call fused with everything else).
        self._forward = jax.jit(
            functools.partial(_stgcn_stub_forward, num_classes=num_classes))

    def __call__(self, x, seed=None):
        # x: (batch, channels, frames, nodes); only batch size is consumed,
        # exactly as in the reference forward.
        if seed is None:
            # Fresh samples on every call (torch.randn semantics); the seed is
            # a traced int32 scalar, so this never triggers recompilation.
            seed = self.seed + self._call_count
            self._call_count += 1
        return self._forward(x, jnp.asarray(seed, jnp.int32))


if __name__ == "__main__":
    key = jax.random.PRNGKey(0)
    batch, channels, frames, nodes = 2, 3, 8, 17
    x = jax.random.normal(key, (batch, channels, frames, nodes), jnp.float32)

    model = STGCNModelPallas(num_classes=12, in_channels=channels,
                             num_nodes=nodes, seed=0)

    y = jax.block_until_ready(model(x))
    assert y.shape == (batch, 12), y.shape
    assert y.dtype == jnp.float32, y.dtype
    assert bool(jnp.all(jnp.isfinite(y)))

    # Successive calls draw fresh samples (mirrors torch.randn).
    y2 = jax.block_until_ready(model(x))
    assert y2.shape == (batch, 12)
    assert not bool(jnp.all(y == y2))

    print("KERNEL_OK")
</pallas_src>

<mosaic_0001>
module attributes {stable_mosaic.version = 11 : i64} {
  func.func @_randn_kernel(%arg0: memref<1xi32, #tpu.memory_space<smem>>, %arg1: memref<2x12xf32, #tpu.memory_space<vmem>>) attributes {dimension_semantics = [], scalar_prefetch = 0 : i64, scratch_operands = 0 : i64, tpu.core_type = #tpu.core_type<tc>} {
    %0 = tpu.iota {dimensions = array<i32: 0>} : vector<2x6xi32>
    %1 = tpu.iota {dimensions = array<i32: 1>} : vector<2x6xi32>
    %c0 = arith.constant 0 : index
    %2 = memref.load %arg0[%c0] : memref<1xi32, #tpu.memory_space<smem>>
    %c6_i32 = arith.constant 6 : i32
    %3 = vector.broadcast %c6_i32 : i32 to vector<2x6xi32>
    %4 = arith.muli %0, %3 : vector<2x6xi32>
    %5 = arith.addi %4, %1 : vector<2x6xi32>
    %c-1640531527_i32 = arith.constant -1640531527 : i32
    %6 = arith.muli %2, %c-1640531527_i32 : i32
    %7 = vector.broadcast %6 : i32 to vector<2x6xi32>
    %8 = arith.addi %5, %7 : vector<2x6xi32>
    %c16_i32 = arith.constant 16 : i32
    %9 = vector.broadcast %c16_i32 : i32 to vector<2x6xi32>
    %10 = arith.shrui %8, %9 : vector<2x6xi32>
    %11 = arith.xori %8, %10 : vector<2x6xi32>
    %c569420461_i32 = arith.constant 569420461 : i32
    %12 = vector.broadcast %c569420461_i32 : i32 to vector<2x6xi32>
    %13 = arith.muli %11, %12 : vector<2x6xi32>
    %c15_i32 = arith.constant 15 : i32
    %14 = vector.broadcast %c15_i32 : i32 to vector<2x6xi32>
    %15 = arith.shrui %13, %14 : vector<2x6xi32>
    %16 = arith.xori %13, %15 : vector<2x6xi32>
    %c1935289751_i32 = arith.constant 1935289751 : i32
    %17 = vector.broadcast %c1935289751_i32 : i32 to vector<2x6xi32>
    %18 = arith.muli %16, %17 : vector<2x6xi32>
    %c15_i32_0 = arith.constant 15 : i32
    %19 = vector.broadcast %c15_i32_0 : i32 to vector<2x6xi32>
    %20 = arith.shrui %18, %19 : vector<2x6xi32>
    %21 = arith.xori %18, %20 : vector<2x6xi32>
    %c1542469173_i32 = arith.constant 1542469173 : i32
    %22 = vector.broadcast %c1542469173_i32 : i32 to vector<2x6xi32>
    %23 = arith.xori %8, %22 : vector<2x6xi32>
    %c16_i32_1 = arith.constant 16 : i32
    %24 = vector.broadcast %c16_i32_1 : i32 to vector<2x6xi32>
    %25 = arith.shrui %23, %24 : vector<2x6xi32>
    %26 = arith.xori %23, %25 : vector<2x6xi32>
    %c569420461_i32_2 = arith.constant 569420461 : i32
    %27 = vector.broadcast %c569420461_i32_2 : i32 to vector<2x6xi32>
    %28 = arith.muli %26, %27 : vector<2x6xi32>
    %c15_i32_3 = arith.constant 15 : i32
    %29 = vector.broadcast %c15_i32_3 : i32 to vector<2x6xi32>
    %30 = arith.shrui %28, %29 : vector<2x6xi32>
    %31 = arith.xori %28, %30 : vector<2x6xi32>
    %c1935289751_i32_4 = arith.constant 1935289751 : i32
    %32 = vector.broadcast %c1935289751_i32_4 : i32 to vector<2x6xi32>
    %33 = arith.muli %31, %32 : vector<2x6xi32>
    %c15_i32_5 = arith.constant 15 : i32
    %34 = vector.broadcast %c15_i32_5 : i32 to vector<2x6xi32>
    %35 = arith.shrui %33, %34 : vector<2x6xi32>
    %36 = arith.xori %33, %35 : vector<2x6xi32>
    %c16777215_i32 = arith.constant 16777215 : i32
    %37 = vector.broadcast %c16777215_i32 : i32 to vector<2x6xi32>
    %38 = arith.andi %21, %37 : vector<2x6xi32>
    %39 = arith.sitofp %38 : vector<2x6xi32> to vector<2x6xf32>
    %cst = arith.constant 5.000000e-01 : f32
    %40 = vector.broadcast %cst : f32 to vector<2x6xf32>
    %41 = arith.addf %39, %40 : vector<2x6xf32>
    %cst_6 = arith.constant 5.96046448E-8 : f32
    %42 = vector.broadcast %cst_6 : f32 to vector<2x6xf32>
    %43 = arith.mulf %41, %42 : vector<2x6xf32>
    %c16777215_i32_7 = arith.constant 16777215 : i32
    %44 = vector.broadcast %c16777215_i32_7 : i32 to vector<2x6xi32>
    %45 = arith.andi %36, %44 : vector<2x6xi32>
    %46 = arith.sitofp %45 : vector<2x6xi32> to vector<2x6xf32>
    %cst_8 = arith.constant 5.000000e-01 : f32
    %47 = vector.broadcast %cst_8 : f32 to vector<2x6xf32>
    %48 = arith.addf %46, %47 : vector<2x6xf32>
    %cst_9 = arith.constant 5.96046448E-8 : f32
    %49 = vector.broadcast %cst_9 : f32 to vector<2x6xf32>
    %50 = arith.mulf %48, %49 : vector<2x6xf32>
    %51 = math.log %43 : vector<2x6xf32>
    %cst_10 = arith.constant -2.000000e+00 : f32
    %52 = vector.broadcast %cst_10 : f32 to vector<2x6xf32>
    %53 = arith.mulf %52, %51 : vector<2x6xf32>
    %54 = math.sqrt %53 : vector<2x6xf32>
    %cst_11 = arith.constant 6.28318548 : f32
    %55 = vector.broadcast %cst_11 : f32 to vector<2x6xf32>
    %56 = arith.mulf %55, %50 : vector<2x6xf32>
    %57 = math.cos %56 : vector<2x6xf32>
    %58 = arith.mulf %54, %57 : vector<2x6xf32>
    %59 = math.sin %56 : vector<2x6xf32>
    %60 = arith.mulf %54, %59 : vector<2x6xf32>
    %61 = tpu.concatenate %58, %60 in 1 : vector<2x6xf32>, vector<2x6xf32> -> vector<2x12xf32>
    %c0_12 = arith.constant 0 : index
    %c0_13 = arith.constant 0 : index
    %62 = vector.load %arg1[%c0_12, %c0_13] : memref<2x12xf32, #tpu.memory_space<vmem>>, vector<2x12xf32>
    tpu.vector_store %arg1[%c0_12, %c0_13], %61 {strides = array<i32>} : memref<2x12xf32, #tpu.memory_space<vmem>>, vector<2x12xf32>,
    return
  }
}

</mosaic_0001>

<bundles_post_ra>
// kernel: _stgcn_stub_forward.1
= control target key start
LH: loop header
LB: loop body
LE: loop exit
PB: predicated region body
PF: predicated region fallthrough
CT: control target
= control target key end

     0   :  { %v10_v0 = vlaneseq  ;;  %s382_s0 = inlined_call_operand.<no memory space> [shape: s32[1], index: 0, kind: input, shape index: {}]   ;;  %s383_s1 = inlined_call_operand.hbm [shape: f32[2,12], index: 1, kind: output, shape index: {}]  }
   0x1   :  { %s17_s8 = smul.u32 2654435769, %s382_s0 }
   0x2   :  { %v11_v1 = vshrl.u32 %v10_v0, 7  ;;  %v13_v2 = vand.u32 127, %v10_v0 }
   0x3   :  { %7 = vsyncpa [#allocation4], 0  ;;  %v18_v4 = vstv %s17_s8  ;;  %v337_v39 = vmov 683565275   ;;  %v338_v41 = vmov 2475754826  }
   0x4   :  { %v15_v3 = vmul.u32 6, %v11_v1  ;;  %v339_v43 = vmov 2131351028   ;;  %v340_v46 = vmov 2102212464   ;;  %s343_s0 = smov 6  }
   0x5   :  { %v341_v48 = vmov 920167782   ;;  %v342_v55 = vmov 1326507024   ;;  %s344_s9 = smov [#allocation3]  }
   0x6   :  { %v16_v5 = vadd.s32 %v15_v3, %v13_v2  ;;  %s279_s10 = sshll.u32 %s344_s9, 4  ;;  %s280_s10 = int_to_ptr.vmem [resolvable:$true] %s279_s10 }
   0x7   :  { %s315_s11 = scalar_lea.vmem %s280_s10, 32  ;;  %p320_p1 = scmp.lt.s32.totalorder %s280_s10, %s280_s10 }
   0x8   :  { %v19_v6 = vadd.s32 %v18_v4, %v16_v5  ;;  %p316_p0 = scmp.ne.s32.totalorder %s280_s10, %s315_s11  ;;  %p321_p2 = scmp.lt.s32.totalorder %s315_s11, %s315_s11 }
   0xa   :  { %v28_v7 = vxor.u32 1542469173, %v19_v6  ;;  %v20_v14 = vshrl.u32 %v19_v6, 16  ;;  %p322_p3 = por %p321_p2, %p320_p1 }
   0xc   :  { %v29_v8 = vshrl.u32 %v28_v7, 16  ;;  %v21_v17 = vxor.u32 %v20_v14, %v19_v6  ;;  %p323_p4 = pnand %p322_p3, %p316_p0 }
   0xe   :  { %v30_v9 = vxor.u32 %v29_v8, %v28_v7  ;;  %v22_v20 = vmul.u32 569420461, %v21_v17 }
  0x10   :  { %v31_v10 = vmul.u32 569420461, %v30_v9  ;;  %v23_v23 = vshrl.u32 %v22_v20, 15 }
  0x12   :  { %v32_v11 = vshrl.u32 %v31_v10, 15  ;;  %v24_v26 = vxor.u32 %v23_v23, %v22_v20 }
  0x14   :  { %v33_v12 = vxor.u32 %v32_v11, %v31_v10  ;;  %v25_v30 = vmul.u32 1935289751, %v24_v26 }
  0x16   :  { %v34_v13 = vmul.u32 1935289751, %v33_v12  ;;  %v26_v34 = vshrl.u32 %v25_v30, 15 }
  0x18   :  { %v35_v15 = vshrl.u32 %v34_v13, 15  ;;  %v27_v45 = vxor.u32 %v26_v34, %v25_v30 }
  0x1a   :  { %v36_v16 = vxor.u32 %v35_v15, %v34_v13  ;;  %v37_v3 = vand.u32 16777215, %v27_v45 }
  0x1c   :  { %v41_v18 = vand.u32 16777215, %v36_v16  ;;  %v38_v16 = vcvt.s32.f32 %v37_v3 }
  0x1e   :  { %v42_v19 = vcvt.s32.f32 %v41_v18 }
  0x20   :  { %v43_v21 = vadd.f32 0.5, %v42_v19  ;;  %v39_v19 = vadd.f32 0.5, %v38_v16 }
  0x22   :  { %v44_v22 = vmul.f32 5.9604645e-08, %v43_v21 }
  0x24   :  { %v358_v24 = vmul.f32 6.2831855, %v44_v22  ;;  %v40_v22 = vmul.f32 5.9604645e-08, %v39_v19 }
  0x26   :  { %v59_v25 = vand.u32 2139095040, %v358_v24  ;;  %v56_v28 = vand.u32 2147483647, %v358_v24  ;;  %307 = vlog2.f32 %v40_v22  ;;  %vm58_vm7 = vcmp.lt.s32.totalorder %v358_v24, 0 }
  0x28   :  { %v60_v27 = vshrl.u32 %v59_v25, 23  ;;  %v63_v32 = vand.u32 8388607, %v56_v28  ;;  %vm57_vm8 = vcmp.le.f32.partialorder %v56_v28, 0.7853982 }
  0x2a   :  { %v287_v29 = vadd.s32 4294967169, %v60_v27  ;;  %v64_v36 = vor.u32 8388608, %v63_v32 }
  0x2c   :  { %v66_v31 = vadd.s32 1, %v287_v29  ;;  %v104_v57 = vshll.u32 %v64_v36, 8 }
  0x2e   :  { %vm67_vm0 = vcmp.gt.s32.totalorder %v66_v31, 0 }
  0x2f   :  { %v68_v33 = vsel %vm67_vm0, %v66_v31, 0 }
  0x30   :  { %v70_v35 = vand.u32 31, %v68_v33  ;;  %v69_v37 = vshrl.u32 %v68_v33, 5 }
  0x32   :  { %v71_v38 = vsub.s32 32, %v70_v35  ;;  %v73_v40 = vshll.u32 %v337_v39, %v70_v35  ;;  %v76_v42 = vshll.u32 %v338_v41, %v70_v35  ;;  %v79_v44 = vshll.u32 %v339_v43, %v70_v35 }
  0x33   :  { %v82_v47 = vshll.u32 %v340_v46, %v70_v35  ;;  %v85_v49 = vshll.u32 %v341_v48, %v70_v35  ;;  %vm88_vm1 = vcmp.lt.s32.totalorder %v69_v37, 1  ;;  %vm91_vm2 = vcmp.lt.s32.totalorder %v69_v37, 4  ;;  %v308_v34 = vpop.eup %307 }
  0x34   :  { %v72_v50 = vshrl.u32 %v337_v39, %v71_v38  ;;  %v74_v51 = vshrl.u32 %v338_v41, %v71_v38  ;;  %v77_v52 = vshrl.u32 %v339_v43, %v71_v38  ;;  %v80_v53 = vshrl.u32 %v340_v46, %v71_v38 }
  0x35   :  { %v83_v54 = vshrl.u32 %v341_v48, %v71_v38  ;;  %v86_v56 = vshrl.u32 %v342_v55, %v71_v38  ;;  %vm89_vm3 = vcmp.lt.s32.totalorder %v69_v37, 2  ;;  %vm90_vm4 = vcmp.lt.s32.totalorder %v69_v37, 3 }
  0x36   :  { %v75_v58 = vor.u32 %v74_v51, %v73_v40  ;;  %v78_v59 = vor.u32 %v77_v52, %v76_v42  ;;  %v81_v60 = vor.u32 %v80_v53, %v79_v44  ;;  %v46_v39 = vmul.f32 0.6931472, %v308_v34 }
  0x37   :  { %v84_v61 = vor.u32 %v83_v54, %v82_v47  ;;  %v87_v62 = vor.u32 %v86_v56, %v85_v49 }
  0x38   :  { %v92_v63 = vsel %vm88_vm1, %v72_v50, %v75_v58  ;;  %v93_v0 = vsel %vm91_vm2, %v81_v60, 2102212464  ;;  %v96_v1 = vsel %vm88_vm1, %v75_v58, %v78_v59  ;;  %v100_v2 = vsel %vm88_vm1, %v78_v59, %v81_v60 }
  0x39   :  { %v94_v4 = vsel %vm90_vm4, %v78_v59, %v93_v0  ;;  %v97_v5 = vsel %vm91_vm2, %v84_v61, 920167782  ;;  %v101_v6 = vsel %vm91_vm2, %v87_v62, 1326507024  ;;  %v47_v44 = vmul.f32 -2.0, %v46_v39 }
  0x3a   :  { %v98_v7 = vsel %vm90_vm4, %v81_v60, %v97_v5  ;;  %v102_v8 = vsel %vm90_vm4, %v84_v61, %v101_v6  ;;  %v95_v9 = vsel %vm89_vm3, %v92_v63, %v94_v4  ;;  %vm148_vm1 = vweird.f32 %v358_v24 }
  0x3b   :  { %v99_v10 = vsel %vm89_vm3, %v96_v1, %v98_v7  ;;  %v103_v11 = vsel %vm89_vm3, %v100_v2, %v102_v8  ;;  %v111_v17 = vmul.u32 %v104_v57, %v95_v9  ;;  %309 = vrsqrt.f32 %v47_v44 }
  0x3c   :  { %v364_v12 = vmul.u32.u64.low %v104_v57, %v103_v11  ;;  %v365_v13 = vmul.u32.u64.high %v104_v57, %v103_v11, %v364_v12  ;;  %v367_v14 = vmul.u32.u64.low %v104_v57, %v99_v10  ;;  %v368_v15 = vmul.u32.u64.high %v104_v57, %v99_v10, %v367_v14 }
  0x3d   :  { %vm50_vm9 = vcmp.eq.f32.partialorder %v47_v44, inf  ;;  %vm52_vm10 = vcmp.eq.f32.partialorder %v47_v44, 0.0  ;;  %v53_v61 = vand.u32 2147483648, %v47_v44  ;;  %vm269_vm2 = vcmask 48128  }
  0x3e   :  { %vm113_vm5 = vc.u32 %v365_v13, %v367_v14  ;;  %v114_v18 = vadd.s32 1, %v368_v15  ;;  %v112_v33 = vadd.s32 %v367_v14, %v365_v13  ;;  %vm271_vm3 = vcmask 91136  }
  0x40   :  { %v115_v20 = vsel %vm113_vm5, %v114_v18, %v368_v15 }
  0x41   :  { %v116_v21 = vadd.s32 %v115_v20, %v111_v17 }
  0x43   :  { %v117_v23 = vadd.s32 536870912, %v116_v21 }
  0x45   :  { %v118_v25 = vshrl.u32 %v117_v23, 30 }
  0x47   :  { %v119_v26 = vshll.u32 %v118_v25, 30  ;;  %v142_v49 = vsub.s32 4, %v118_v25 }
  0x48   :  { %v310_v56 = vpop.eup %309 }
  0x49   :  { %v120_v27 = vsub.s32 %v116_v21, %v119_v26  ;;  %v143_v52 = vsel %vm58_vm7, %v142_v49, %v118_v25  ;;  %v49_v59 = vmul.f32 %v310_v56, %v47_v44 }
  0x4a   :  { %v145_v54 = vsel %vm57_vm8, 0, %v143_v52 }
  0x4b   :  { %v122_v29 = vsub.s32 0, %v120_v27  ;;  %v253_v55 = vadd.s32 3, %v145_v54  ;;  %v149_v57 = vand.u32 3, %v145_v54  ;;  %v51_v62 = vsel %vm50_vm9, %v47_v44, %v49_v59 }
  0x4c   :  { %v54_v3 = vsel %vm52_vm10, %v53_v61, %v51_v62 }
  0x4d   :  { %v288_v30 = vmin.u32 %v122_v29, %v120_v27  ;;  %v254_v58 = vand.u32 3, %v253_v55  ;;  %vm154_vm11 = vcmp.eq.s32.totalorder %v149_v57, 2  ;;  %vm151_vm13 = vcmp.eq.s32.totalorder %v149_v57, 0 }
  0x4e   :  { %vm150_vm15 = vcmp.lt.s32.totalorder %v149_v57, 2 }
  0x4f   :  { %v124_v31 = vclz %v288_v30  ;;  %vm259_vm12 = vcmp.eq.s32.totalorder %v254_v58, 2  ;;  %vm256_vm14 = vcmp.eq.s32.totalorder %v254_v58, 0  ;;  %vm255_vm0 = vcmp.lt.s32.totalorder %v254_v58, 2 }
  0x51   :  { %v289_v32 = vadd.s32 4294967294, %v124_v31 }
  0x53   :  { %vm290_vm6 = vcmp.lt.s32.totalorder %v289_v32, 0 }
  0x54   :  { %v127_v35 = vsel %vm290_vm6, 0, %v289_v32 }
  0x55   :  { %v128_v36 = vsub.s32 32, %v127_v35  ;;  %v129_v37 = vshll.u32 %v120_v27, %v127_v35  ;;  %v132_v38 = vsub.s32 4294967266, %v127_v35 }
  0x57   :  { %v130_v40 = vshrl.u32 %v112_v33, %v128_v36  ;;  %v133_v41 = vadd.s32 127, %v132_v38 }
  0x59   :  { %v131_v42 = vor.u32 %v130_v40, %v129_v37  ;;  %v134_v43 = vshll.u32 %v133_v41, 23 }
  0x5b   :  { %v135_v45 = vor.u32 4788187, %v134_v43  ;;  %v138_v46 = vcvt.s32.f32 %v131_v42 }
  0x5d   :  { %v136_v47 = vand.u32 2147483647, %v135_v45 }
  0x5f   :  { %v139_v48 = vmul.f32 %v138_v46, %v136_v47 }
  0x61   :  { %v140_v50 = vxor.u32 2147483648, %v139_v48 }
  0x63   :  { %v141_v51 = vsel %vm58_vm7, %v140_v50, %v139_v48 }
  0x64   :  { %v144_v53 = vsel %vm57_vm8, %v358_v24, %v141_v51 }
  0x65   :  { %311 = vcosq.f32 %v144_v53 }
  0x66   :  { %313 = vsinq.f32 %v144_v53 }
  0x72   :  { %v312_v60 = vpop.eup %311 }
  0x73   :  { %v314_v28 = vpop.eup %313  ;;  %v155_v63 = vxor.u32 2147483648, %v312_v60 }
  0x74   :  { %v152_v0 = vxor.u32 2147483648, %v314_v28 }
  0x75   :  { %v156_v1 = vsel %vm154_vm11, %v155_v63, %v314_v28  ;;  %v261_v2 = vsel %vm259_vm12, %v155_v63, %v314_v28 }
  0x76   :  { %v153_v4 = vsel %vm151_vm13, %v312_v60, %v152_v0  ;;  %v258_v5 = vsel %vm256_vm14, %v312_v60, %v152_v0 }
  0x77   :  { %v157_v6 = vsel %vm150_vm15, %v153_v4, %v156_v1  ;;  %v262_v7 = vsel %vm255_vm0, %v258_v5, %v261_v2 }
  0x78   :  { %v158_v8 = vsel %vm148_vm1, nan, %v157_v6  ;;  %v263_v9 = vsel %vm148_vm1, nan, %v262_v7 }
  0x79   :  { %v159_v10 = vmul.f32 %v158_v8, %v54_v3  ;;  %v264_v11 = vmul.f32 %v263_v9, %v54_v3 }
  0x7b   :  { %266 = vrot.lane.b32.xlu0 %v264_v11, %s343_s0 }
  0xed   :  { %v267_v12 = vpop.permute.xlu0 %266 }
  0xee   :  { %v270_v24 = vsel %vm269_vm2, %v159_v10, %v267_v12 }
  0xef   :  { %272 = vst.msk [vmem:[#allocation3] sm:$0x3] %vm271_vm3, %v270_v24 }
  0xf0   :  { %326 = shalt.err (!%p323_p4)
}
  0xf1   :  { %282 = dma.vmem_to_hbm [thread:$0]  %s280_s10, 32, %s383_s1, [#allocation4]  }
  0xf2   :  { %335 = dma.done.wait [#allocation4], 32  }
  0xf3   :  { %336 = vsyncadd [#allocation4], 4294967264 }
  0xf4   :  { %286 = vsyncpa [#allocation4], 1 }

</bundles_post_ra>
